<compile_context>
chip_gen: v6e
topology: v6e:2x2x1
jax: 0.10.0
libtpu: 0.0.40
codegen_flags: <defaults>
</compile_context>

<pallas_src>
import math

import jax
import jax.numpy as jnp
from jax.experimental import pallas as pl
from jax.experimental.pallas import tpu as pltpu


# ---------------------------------------------------------------------------
# Kernel body
# ---------------------------------------------------------------------------
def _bdl_kernel(x_ref, w_ref, b_ref, o_ref):
    # x_ref: (tm, gw), w_ref: (gw, gw), b_ref: (1, gw), o_ref: (tm, gw)
    acc = jnp.dot(x_ref[...], w_ref[...], preferred_element_type=jnp.float32)
    o_ref[...] = (acc + b_ref[...].astype(jnp.float32)).astype(o_ref.dtype)


# ---------------------------------------------------------------------------
# Generation-aware hardware / tiling policy
# ---------------------------------------------------------------------------
def _round_up(x, m):
    return ((x + m - 1) // m) * m


def _hw_params():
    """Returns (vmem_capacity_bytes, scoped_budget_bytes, is_v5e)."""
    kind = ""
    try:
        kind = jax.devices()[0].device_kind.lower()
    except Exception:
        pass
    is_v5e = ("v5 lite" in kind) or ("v5e" in kind) or ("v5lite" in kind)

    cap = None
    try:
        cap = int(pltpu.get_tpu_info().vmem_capacity_bytes)
    except Exception:
        cap = None
    if cap is None:
        # Conservative default when the query is unavailable.
        cap = (128 << 20) if (is_v5e or "v6" in kind) else (64 << 20)

    if cap <= (64 << 20):
        budget = 40 << 20       # v7x: 64 MiB physical, leave compiler headroom
    else:
        budget = 88 << 20       # v5e / v6e: 128 MiB physical
    budget = min(budget, cap - (16 << 20))
    return cap, budget, is_v5e


def _choose_group_size(num_blocks, block_width, itemsize, lane_target, max_w_bytes):
    """Smallest divisor G of num_blocks so gw = G*block_width hits the lane
    target and the double-buffered (gw, gw) group weight fits the budget."""
    def w_fits(g):
        gw = g * block_width
        return 2 * gw * gw * itemsize <= max_w_bytes

    for target in sorted({lane_target, 128}, reverse=True):
        for g in range(1, num_blocks + 1):
            if num_blocks % g == 0 and (g * block_width) % target == 0 and w_fits(g):
                return g
    # No lane-aligned grouping exists: fuse everything. gw then equals the full
    # width (== the full array dim), so the block shape stays legal even when
    # width is not a multiple of 128 -- but only if the dense weight fits VMEM.
    if w_fits(num_blocks):
        return num_blocks
    # TODO(synk): add a K-tiled contraction path (extra "arbitrary" grid axis
    # with an f32 VMEM accumulator) instead of refusing to densify here.
    raise ValueError(
        "block_diagonal_linear: no lane-aligned block grouping fits in VMEM "
        f"(num_blocks={num_blocks}, block_width={block_width}).")


# ---------------------------------------------------------------------------
# Parameter preparation (hoist out of the per-call path / cache per weights)
# ---------------------------------------------------------------------------
def prepare_block_diagonal_params(w, b, x_dtype=None):
    """Builds the fused block-diagonal *group* weights and biases once.

    Call this at parameter-load time (not per forward call) so the G-times
    inflated group weight is not rebuilt and rewritten to HBM on every call.

    Returns (w_grp, b_grp) of shapes (ng, gw, gw) and (ng, 1, gw), cast to the
    activation dtype.
    """
    num_blocks, bw, bw2 = w.shape
    assert bw == bw2 and b.shape == (num_blocks, bw)
    out_dtype = jnp.dtype(x_dtype) if x_dtype is not None else jnp.dtype(w.dtype)
    itemsize = out_dtype.itemsize

    _, budget, is_v5e = _hw_params()
    # v6e/v7x MXUs are 256 wide and longer contiguous DMA segments help the
    # strided column-slice reads everywhere; only plain-f32 v5e keeps the
    # 128-lane target (its MXU is 128x128 and f32 segments are already 512 B).
    lane_target = 128 if (is_v5e and itemsize >= 4) else 256
    G = _choose_group_size(num_blocks, bw, itemsize, lane_target,
                           max_w_bytes=budget // 2)
    gw = G * bw
    ng = num_blocks // G

    w_r = w.astype(out_dtype).reshape(ng, G, bw, bw)
    eye = jnp.eye(G, dtype=out_dtype)
    w_grp = w_r[:, :, None, :, :] * eye[None, :, :, None, None]   # (ng, G, G, bw, bw)
    w_grp = w_grp.transpose(0, 1, 3, 2, 4).reshape(ng, gw, gw)
    b_grp = b.astype(out_dtype).reshape(ng, 1, gw)
    return w_grp, b_grp


# ---------------------------------------------------------------------------
# Forward pass
# ---------------------------------------------------------------------------
def block_diagonal_linear_grouped(x, w_grp, b_grp):
    """Applies the layer given pre-fused group weights (preferred entry point)."""
    ng, gw, _ = w_grp.shape
    width = ng * gw
    assert x.shape[-1] == width

    lead_shape = x.shape[:-1]
    M = math.prod(lead_shape)              # static; no device work

    # Collapse leading dims only (free, row-major). No transposes.
    x2 = x.reshape(M, width)

    itemsize = jnp.dtype(x.dtype).itemsize
    sub = max(8, 32 // itemsize)           # 8 (f32) / 16 (bf16) / 32 (int8)

    cap, budget, _ = _hw_params()
    w_itemsize = jnp.dtype(w_grp.dtype).itemsize
    w_bytes = 2 * gw * gw * w_itemsize                    # double-buffered weight
    b_bytes = 2 * gw * jnp.dtype(b_grp.dtype).itemsize    # double-buffered bias
    # Per M-row VMEM: double-buffered x tile + out tile + f32 matmul accumulator.
    per_row = gw * (2 * itemsize + 2 * itemsize + 4)
    avail = max(budget - w_bytes - b_bytes, per_row * sub)

    # Large M tiles so each grid step moves >= ~1-2 MiB (mem-bound: amortize the
    # ~0.35us per-step pipeline overhead). Still bounded by the VMEM budget.
    tm = min(4096, avail // per_row)
    tm = max(sub, (tm // sub) * sub)
    if M <= tm:
        if ng == 1 and M > sub:
            # Guarantee >= 2 grid steps so v7x megacore can shard the grid.
            tm = max(sub, _round_up(pl.cdiv(M, 2), sub))
        else:
            tm = M                          # single tile; full-dim block is legal
    nm = pl.cdiv(M, tm)

    usage = w_bytes + b_bytes + per_row * tm
    vmem_limit = int(min(cap - (8 << 20), max(usage + (8 << 20), 32 << 20)))

    out2 = pl.pallas_call(
        _bdl_kernel,
        out_shape=jax.ShapeDtypeStruct((M, width), x.dtype),
        grid_spec=pltpu.PrefetchScalarGridSpec(
            num_scalar_prefetch=0,
            grid=(ng, nm),                                        # group outer, M inner
            in_specs=[
                pl.BlockSpec((tm, gw), lambda g, m: (m, g)),          # x cols of group g
                pl.BlockSpec((None, gw, gw), lambda g, m: (g, 0, 0)),  # group weight (resident over m)
                pl.BlockSpec((None, 1, gw), lambda g, m: (g, 0, 0)),   # group bias
            ],
            out_specs=pl.BlockSpec((tm, gw), lambda g, m: (m, g)),
        ),
        compiler_params=pltpu.CompilerParams(
            dimension_semantics=("parallel", "parallel"),
            vmem_limit_bytes=vmem_limit,
        ),
    )(x2, w_grp, b_grp)

    return out2.reshape(*lead_shape, width)


def block_diagonal_linear(x, w, b):
    """One-shot convenience wrapper.

    For repeated calls (training / decoding), call prepare_block_diagonal_params
    once and use block_diagonal_linear_grouped to avoid rebuilding the fused
    group weights every forward pass.
    """
    w_grp, b_grp = prepare_block_diagonal_params(w, b, x_dtype=x.dtype)
    return block_diagonal_linear_grouped(x, w_grp, b_grp)


def init_params(key, width, num_blocks, w_init_variance_scale=1.0, dtype=jnp.float32):
    """Init matching the PyTorch module's reset_parameters (bias = 0)."""
    block_width = width // num_blocks
    std = math.sqrt(w_init_variance_scale / block_width)
    w = std * jax.random.normal(key, (num_blocks, block_width, block_width), dtype=dtype)
    b = jnp.zeros((num_blocks, block_width), dtype=dtype)
    return w, b


if __name__ == "__main__":
    # Small shapes consistent with the module: batch=2, seq=8, width=256, 8 blocks.
    batch, seq, width, num_blocks = 2, 8, 256, 8
    bw = width // num_blocks

    key = jax.random.PRNGKey(0)
    kx, kw, kb = jax.random.split(key, 3)

    x = jax.random.normal(kx, (batch, seq, width), dtype=jnp.float32)
    w, _ = init_params(kw, width, num_blocks)
    # Non-zero bias to exercise the bias path (module init is zero; see init_params).
    b = 0.1 * jax.random.normal(kb, (num_blocks, bw), dtype=jnp.float32)

    # Recommended usage: fuse group weights once, reuse across calls.
    w_grp, b_grp = prepare_block_diagonal_params(w, b, x_dtype=x.dtype)
    y = jax.block_until_ready(block_diagonal_linear_grouped(x, w_grp, b_grp))

    # Pure-JAX reference.
    x_r = x.reshape(batch, seq, num_blocks, bw)
    y_ref = (jnp.einsum("bshi,hij->bshj", x_r, w) + b).reshape(batch, seq, width)
    assert y.shape == (batch, seq, width)
    assert jnp.allclose(y, y_ref, atol=2e-2, rtol=2e-2)

    # Ragged leading size (M not a multiple of the M tile / sublane packing)
    # exercises the masked final tile, via the one-shot wrapper.
    x_odd = jax.random.normal(kx, (3, 5, width), dtype=jnp.float32)
    y_odd = jax.block_until_ready(block_diagonal_linear(x_odd, w, b))
    y_odd_ref = (jnp.einsum("bshi,hij->bshj",
                            x_odd.reshape(3, 5, num_blocks, bw), w) + b
                 ).reshape(3, 5, width)
    assert jnp.allclose(y_odd, y_odd_ref, atol=2e-2, rtol=2e-2)

    print("KERNEL_OK")
</pallas_src>

<mosaic_0001>
module attributes {stable_mosaic.version = 11 : i64} {
  func.func @_bdl_kernel(%arg0: i32, %arg1: i32, %arg2: memref<8x256xf32, #tpu.memory_space<vmem>>, %arg3: memref<1x256x256xf32, #tpu.memory_space<vmem>>, %arg4: memref<1x1x256xf32, #tpu.memory_space<vmem>>, %arg5: memref<8x256xf32, #tpu.memory_space<vmem>>) attributes {dimension_semantics = [#tpu.dimension_semantics<parallel>, #tpu.dimension_semantics<parallel>], iteration_bounds = array<i64: 1, 2>, scalar_prefetch = 0 : i64, scratch_operands = 0 : i64, tpu.core_type = #tpu.core_type<tc>, window_params = [{transform_indices = @transform_0, window_bounds = array<i64: 8, 256>}, {transform_indices = @transform_1, window_bounds = array<i64: 1, 256, 256>}, {transform_indices = @transform_2, window_bounds = array<i64: 1, 1, 256>}, {transform_indices = @transform_3, window_bounds = array<i64: 8, 256>}]} {
    %c0 = arith.constant 0 : index
    %c0_0 = arith.constant 0 : index
    %0 = vector.load %arg2[%c0, %c0_0] : memref<8x256xf32, #tpu.memory_space<vmem>>, vector<8x256xf32>
    %c0_1 = arith.constant 0 : index
    %c0_2 = arith.constant 0 : index
    %c0_3 = arith.constant 0 : index
    %1 = vector.load %arg3[%c0_1, %c0_2, %c0_3] : memref<1x256x256xf32, #tpu.memory_space<vmem>>, vector<1x256x256xf32>
    %2 = vector.shape_cast %1 : vector<1x256x256xf32> to vector<256x256xf32>
    %cst = arith.constant dense<0.000000e+00> : vector<8x256xf32>
    %3 = tpu.matmul %0, %2, %cst {dimension_numbers = #tpu.dot_dimension_numbers<[1], [0], [0], [1], [0, 0, 1, 1], [], []>} : vector<8x256xf32>, vector<256x256xf32>, vector<8x256xf32> -> vector<8x256xf32>
    %c0_4 = arith.constant 0 : index
    %c0_5 = arith.constant 0 : index
    %c0_6 = arith.constant 0 : index
    %4 = vector.load %arg4[%c0_4, %c0_5, %c0_6] : memref<1x1x256xf32, #tpu.memory_space<vmem>>, vector<1x1x256xf32>
    %5 = vector.shape_cast %4 : vector<1x1x256xf32> to vector<1x256xf32>
    %6 = vector.broadcast %5 : vector<1x256xf32> to vector<8x256xf32>
    %7 = arith.addf %3, %6 : vector<8x256xf32>
    %c0_7 = arith.constant 0 : index
    %c0_8 = arith.constant 0 : index
    %8 = vector.load %arg5[%c0_7, %c0_8] : memref<8x256xf32, #tpu.memory_space<vmem>>, vector<8x256xf32>
    tpu.vector_store %arg5[%c0_7, %c0_8], %7 {strides = array<i32>} : memref<8x256xf32, #tpu.memory_space<vmem>>, vector<8x256xf32>,
    return
  }
  func.func @transform_0(%arg0: i32, %arg1: i32) -> (i32, i32) {
    %c0_i32 = arith.constant 0 : i32
    return %arg1, %arg0 : i32, i32
  }
  func.func @transform_1(%arg0: i32, %arg1: i32) -> (i32, i32, i32) {
    %c0_i32 = arith.constant 0 : i32
    %c0_i32_0 = arith.constant 0 : i32
    %c0_i32_1 = arith.constant 0 : i32
    return %arg0, %c0_i32, %c0_i32_0 : i32, i32, i32
  }
  func.func @transform_2(%arg0: i32, %arg1: i32) -> (i32, i32, i32) {
    %c0_i32 = arith.constant 0 : i32
    %c0_i32_0 = arith.constant 0 : i32
    %c0_i32_1 = arith.constant 0 : i32
    return %arg0, %c0_i32, %c0_i32_0 : i32, i32, i32
  }
  func.func @transform_3(%arg0: i32, %arg1: i32) -> (i32, i32) {
    %c0_i32 = arith.constant 0 : i32
    return %arg1, %arg0 : i32, i32
  }
}

</mosaic_0001>

<bundles_post_ra>
// kernel: tpu_custom_call.1
= control target key start
LH: loop header
LB: loop body
LE: loop exit
PB: predicated region body
PF: predicated region fallthrough
CT: control target
= control target key end

     0   :  { %8 = vsyncpa [#allocation3], 0  ;;  %s964_s0 = inlined_call_operand.hbm [shape: f32[16,256], index: 0, kind: input, shape index: {}]   ;;  %s965_s1 = inlined_call_operand.hbm [shape: f32[1,256,256], index: 1, kind: input, shape index: {}]   ;;  %s966_s2 = inlined_call_operand.vmem [shape: f32[1,1,256], index: 2, kind: input, shape index: {}]   ;;  %s967_s3 = inlined_call_operand.hbm [shape: f32[16,256], index: 3, kind: output, shape index: {}]  }
   0x1   :  { %10 = vsyncpa [#allocation3 + $0x1], 0 }
   0x2   :  { %11 = vsyncpa [#allocation6], 0 }
   0x3   :  { %12 = vsyncpa [#allocation4], 0 }
   0x4   :  { %14 = vsyncpa [#allocation4 + $0x1], 0  ;;  %s786_s12 = smov 0   ;;  %s788_s13 = smov 0  }
   0x5   :  { %s790_s14 = smov 0   ;;  %s792_s15 = smov 0  }
   0x6   :  { %s794_s16 = smov 0   ;;  %s796_s17 = smov 0  }
   0x7 LB: > { %s526_s18 = sadd.s32 4294967295, %s759_s17   ;;  %s527_s19 = sadd.s32 4294967294, %s759_s17   ;;  %s759_s17 = sphi %s796_s17, %s20_s17   ;;  %s755_s16 = sphi %s794_s16, %s985_s16   ;;  %s751_s15 = sphi %s792_s15, %s984_s15   ;;  %s747_s14 = sphi %s790_s14, %s983_s14   ;;  %s743_s13 = sphi %s788_s13, %s982_s13   ;;  %s739_s12 = sphi %s786_s12, %s981_s12  }
   0x8   : > { %p54_p0 = scmp.ne.s32.totalorder %s743_s13, %s739_s12  ;;  %p820_p1 = scmp.eq.s32.totalorder %s526_s18, 0 }
   0x9   : > { %p824_p2 = scmp.eq.s32.totalorder %s526_s18, 1  ;;  %p138_p3 = scmp.eq.s32.totalorder %s527_s19, 1 }
   0xa   : > { %p830_p4 = por %p820_p1, %p54_p0  ;;  %p528_p5 = scmp.ge.s32.totalorder %s759_s17, 1 }
   0xb   : > { %p835_p6 = por %p138_p3, %p54_p0  ;;  %p145_p7 = scmp.lt.s32.totalorder %s759_s17, 3 }
   0xc   : > { %s971_s22 = scalar_select %p830_p4, 1, 0 }
   0xd   : > { %s972_s23 = scalar_select %p835_p6, 1, 0 }
   0xe   : > { %p840_p8 = pnand %p528_p5, %p145_p7  ;;  %s761_s25 = smov [#allocation5]  }
   0xf   : > { %s160_s26 = sshll.u32 %s761_s25, 4  ;;  %s29_s28 = sadd.s32 1, %s755_s16  ;;  %s161_s26 = int_to_ptr.vmem [resolvable:$true] %s160_s26 }
  0x10   : > { %p554_p9 = pneg %p840_p8  ;;  %s632_s29 = scalar_lea.vmem %s161_s26, 8192 }
  0x11   : > { %p633_p13 = scmp.ne.s32.totalorder %s161_s26, %s632_s29  ;;  %p640_p5 = scmp.lt.s32.totalorder %s161_s26, %s161_s26 }
  0x12   : > { %p849_p11 = pnand %p554_p9, %p820_p1  ;;  %p641_p7 = scmp.lt.s32.totalorder %s632_s29, %s632_s29 }
  0x14   : > { %p623_p12 = pneg %p849_p11  ;;  %p642_p6 = por %p641_p7, %p640_p5 }
  0x16   : > { %p635_p0 = pnand %p633_p13, %p623_p12 }
  0x18   : > { %p636_p3 = pneg %p635_p0 }
  0x1a   : > { %p643_p4 = pnand %p642_p6, %p636_p3 }
  0x1c   : > { %646 = shalt.err (!%p643_p4)
}
  0x1d   : > { %s762_s30 = smov 256   ;;  %s763_s4 = smov 16  }
  0x1e   : > { %557 = dma.hbm_to_vmem [thread:$0]  (!%p849_p11), %s965_s1, 8192, %s161_s26, [#allocation6], %s762_s30, %s762_s30, %s763_s4  }
  0x1f   : > { %p30_p6 = scmp.ge.s32.totalorder %s29_s28, 2  ;;  %s41_s7 = sadd.s32 1, %s747_s14 }
  0x20   : > { %p48_p4 = scmp.ne.s32.totalorder %s747_s14, %s743_s13  ;;  %p49_p9 = scmp.eq.s32.totalorder %s759_s17, 0 }
  0x21   : > { %s987_s28 = smov (%p30_p6, %s29_s28), 0  ;;  %p567_p0 = scmp.lt.s32.totalorder %s759_s17, 2 }
  0x22   : > { %p867_p12 = por %p49_p9, %p48_p4  ;;  %p873_p13 = por %p824_p2, %p48_p4 }
  0x23   : > { %s36_s10 = ssub.s32 %s755_s16, %s987_s28  ;;  %s181_s11 = sand.u32 1, %s747_s14  }
  0x24   : > { %p39_p11 = scmp.eq.s32.totalorder %s36_s10, 0  ;;  %s532_s18 = sshll.u32 %s181_s11, 4 }
  0x25   : > { %s544_s25 = sshll.u32 %s755_s16, 8  ;;  %s185_s30 = scalar_lea.vmem [#allocation2], %s532_s18 }
  0x26   : > { %s882_s19 = scalar_select %p39_p11, %s747_s14, %s41_s7  }
  0x27   : > { %s193_s29 = scalar_lea.hbm %s964_s0, %s544_s25  ;;  %s195_s4 = sshll.u32 %s185_s30, 4  ;;  %s196_s4 = int_to_ptr.vmem [resolvable:$true] %s195_s4 }
  0x28   : > { %p890_p2 = pnand %p567_p0, %p867_p12  ;;  %s182_s5 = scalar_lea.sflag [#allocation3], %s181_s11 }
  0x29   : > { %s660_s6 = scalar_lea.vmem %s196_s4, 256  ;;  %s764_s7 = smov [#allocation2]  }
  0x2a   : > { %p649_p3 = pneg %p890_p2  ;;  %p661_p5 = scmp.ne.s32.totalorder %s196_s4, %s660_s6 }
  0x2b   : > { %s665_s10 = sshll.u32 %s764_s7, 4  ;;  %s666_s10 = int_to_ptr.vmem [resolvable:$false] %s665_s10 }
  0x2c   : > { %p663_p7 = pnand %p661_p5, %p649_p3  ;;  %s667_s25 = scalar_lea.vmem %s666_s10, 512 }
  0x2d   : > { %p668_p4 = scmp.lt.s32.totalorder %s196_s4, %s666_s10  ;;  %p669_p9 = scmp.lt.s32.totalorder %s667_s25, %s660_s6 }
  0x2e   : > { %p664_p6 = pneg %p663_p7 }
  0x2f   : > { %p670_p11 = por %p669_p9, %p668_p4 }
  0x31   : > { %p671_p10 = pnand %p670_p11, %p664_p6 }
  0x33   : > { %674 = shalt.err (!%p671_p10)
}
  0x34   : > { %561 = dma.hbm_to_vmem [thread:$0]  (!%p890_p2), %s193_s29, 256, %s196_s4, %s182_s5  }
  0x35   : > { %204 = sbr.rel (%p840_p8) target bundleno = 336 (0x150), region = 32  ;;  %s901_s8 = sand.u32 (!%p840_p8), 1, %s743_s13  }
  0x36   : > { %s536_s11 = sshll.u32 (!%p840_p8), %s901_s8, 4  ;;  %s207_s18 = scalar_lea.sflag (!%p840_p8), [#allocation3], %s901_s8 }
  0x37   : > { %s907_s26 = scalar_lea.vmem (!%p840_p8), [#allocation2], %s536_s11  ;;  %p978_p12 = scmp.ne.s32.totalorder (!%p840_p8), %s971_s22, 0 }
  0x3a   : > { %726 = dma.done.wait (%p978_p12), %s207_s18, 256  }
  0x3b   : > { %728 = vsyncadd (%p978_p12), %s207_s18, 4294967040 }
  0x3c   : > { %730 = dma.done.wait (%p820_p1), [#allocation6], 8192  }
  0x3d   : > { %732 = vsyncadd (%p820_p1), [#allocation6], 4294959104  ;;  %v280_v0 = vld [vmem:[#allocation5 + $0xf8] sm:$0xff]  ;;  %v279_v1 = vld [vmem:[#allocation5 + $0xf0] sm:$0xff]  ;;  %s545_s24 = sshll.u32 %s751_s15, 8  ;;  %s240_s27 = scalar_lea.vmem [#allocation7], %s536_s11 }
  0x3e   : > { %v278_v2 = vld [vmem:[#allocation5 + $0xe8] sm:$0xff]  ;;  %325 = vmatprep.subr.mxu0 %v280_v0  ;;  %v277_v3 = vld [vmem:[#allocation5 + $0xe0] sm:$0xff]  ;;  %v276_v4 = vld [vmem:[#allocation5 + $0xd8] sm:$0xff]  ;;  %s415_s29 = sshll.u32 %s240_s27, 4  ;;  %s413_s21 = scalar_lea.hbm %s967_s3, %s545_s24  ;;  %s416_s29 = int_to_ptr.vmem [resolvable:$true] %s415_s29 }
  0x3f   : > { %326 = vmatpush1.msra.mxu0 %v279_v1  ;;  %v275_v5 = vld [vmem:[#allocation5 + $0xd0] sm:$0xff]  ;;  %v274_v6 = vld [vmem:[#allocation5 + $0xc8] sm:$0xff]  ;;  %v273_v7 = vld [vmem:[#allocation5 + $0xc0] sm:$0xff]  ;;  %s399_s5 = scalar_lea.sflag [#allocation4], %s901_s8  ;;  %s675_s6 = scalar_lea.vmem %s416_s29, 256 }
  0x40   : > { %327 = vmatprep.subr.mxu0 %v278_v2  ;;  %v272_v8 = vld [vmem:[#allocation5 + $0xb8] sm:$0xff]  ;;  %v271_v9 = vld [vmem:[#allocation5 + $0xb0] sm:$0xff]  ;;  %v270_v10 = vld [vmem:[#allocation5 + $0xa8] sm:$0xff]  ;;  %v315_v2 = vlaneseq  ;;  %p676_p1 = scmp.ne.s32.totalorder %s416_s29, %s675_s6  ;;  %s765_s15 = smov [#allocation7]  }
  0x41   : > { %328 = vmatpush1.msra.mxu0 %v277_v3  ;;  %v269_v11 = vld [vmem:[#allocation5 + $0xa0] sm:$0xff]  ;;  %v268_v12 = vld [vmem:[#allocation5 + $0x98] sm:$0xff]  ;;  %v267_v13 = vld [vmem:[#allocation5 + $0x90] sm:$0xff]  ;;  %s679_s7 = sshll.u32 %s765_s15, 4  ;;  %s680_s7 = int_to_ptr.vmem [resolvable:$false] %s679_s7 }
  0x42   : > { %329 = vmatprep.subr.mxu0 %v276_v4  ;;  %v266_v14 = vld [vmem:[#allocation5 + $0x88] sm:$0xff]  ;;  %v265_v15 = vld [vmem:[#allocation5 + $0x80] sm:$0xff]  ;;  %v264_v16 = vld [vmem:[#allocation5 + $0x78] sm:$0xff]  ;;  %v316_v3 = vshrl.u32 %v315_v2, 7  ;;  %p677_p8 = pnand %p676_p1, %p873_p13  ;;  %s681_s10 = scalar_lea.vmem %s680_s7, 512 }
  0x43   : > { %330 = vmatpush1.msra.mxu0 %v275_v5  ;;  %v263_v17 = vld [vmem:[#allocation5 + $0x70] sm:$0xff]  ;;  %v262_v18 = vld [vmem:[#allocation5 + $0x68] sm:$0xff]  ;;  %v261_v19 = vld [vmem:[#allocation5 + $0x60] sm:$0xff]  ;;  %p682_p0 = scmp.lt.s32.totalorder %s416_s29, %s680_s7  ;;  %p683_p2 = scmp.lt.s32.totalorder %s681_s10, %s675_s6 }
  0x44   : > { %331 = vmatprep.subr.mxu0 %v274_v6  ;;  %v260_v20 = vld [vmem:[#allocation5 + $0x58] sm:$0xff]  ;;  %v259_v21 = vld [vmem:[#allocation5 + $0x50] sm:$0xff]  ;;  %v258_v22 = vld [vmem:[#allocation5 + $0x48] sm:$0xff]  ;;  %v317_v4 = vsub.s32 0, %v316_v3  ;;  %v321_v6 = vsub.s32 1, %v316_v3  ;;  %p678_p10 = pneg %p677_p8 }
  0x45   : > { %332 = vmatpush1.msra.mxu0 %v273_v7  ;;  %v257_v23 = vld [vmem:[#allocation5 + $0x40] sm:$0xff]  ;;  %v248_v24 = vld [vmem:[%s907_s26 + $0x8] sm:$0xff]  ;;  %v255_v26 = vld [vmem:[#allocation5 + $0x30] sm:$0xff]  ;;  %p684_p3 = por %p683_p2, %p682_p0 }
  0x46   : > { %333 = vmatprep.subr.mxu0 %v272_v8  ;;  %v256_v25 = vld [vmem:[#allocation5 + $0x38] sm:$0xff]  ;;  %389 = vmatprep.mubr.f32.mxu0 %v248_v24  ;;  %v254_v27 = vld [vmem:[#allocation5 + $0x28] sm:$0xff]  ;;  %v253_v28 = vld [vmem:[#allocation5 + $0x20] sm:$0xff] }
  0x47   : > { %334 = vmatpush1.msra.mxu0 %v271_v9  ;;  %v252_v29 = vld [vmem:[#allocation5 + $0x18] sm:$0xff]  ;;  %v251_v30 = vld [vmem:[#allocation5 + $0x10] sm:$0xff]  ;;  %v250_v31 = vld [vmem:[#allocation5 + $0x8] sm:$0xff]  ;;  %p685_p5 = pnand %p684_p3, %p678_p10 }
  0x48   : > { %335 = vmatprep.subr.mxu0 %v270_v10  ;;  %v249_v32 = vld [vmem:[#allocation5] sm:$0xff]  ;;  %v312_v33 = vld [vmem:[#allocation5 + $0x1f8] sm:$0xff]  ;;  %v311_v34 = vld [vmem:[#allocation5 + $0x1f0] sm:$0xff] }
  0x49   : > { %336 = vmatpush1.msra.mxu0 %v269_v11  ;;  %v310_v35 = vld [vmem:[#allocation5 + $0x1e8] sm:$0xff]  ;;  %v309_v36 = vld [vmem:[#allocation5 + $0x1e0] sm:$0xff]  ;;  %v308_v37 = vld [vmem:[#allocation5 + $0x1d8] sm:$0xff] }
  0x4a   : > { %337 = vmatprep.subr.mxu0 %v268_v12  ;;  %v307_v38 = vld [vmem:[#allocation5 + $0x1d0] sm:$0xff]  ;;  %v306_v39 = vld [vmem:[#allocation5 + $0x1c8] sm:$0xff]  ;;  %v305_v40 = vld [vmem:[#allocation5 + $0x1c0] sm:$0xff] }
  0x4b   : > { %338 = vmatpush1.msra.mxu0 %v267_v13  ;;  %v304_v41 = vld [vmem:[#allocation5 + $0x1b8] sm:$0xff]  ;;  %v303_v42 = vld [vmem:[#allocation5 + $0x1b0] sm:$0xff]  ;;  %v302_v43 = vld [vmem:[#allocation5 + $0x1a8] sm:$0xff] }
  0x4c   : > { %339 = vmatprep.subr.mxu0 %v266_v14  ;;  %v301_v44 = vld [vmem:[#allocation5 + $0x1a0] sm:$0xff]  ;;  %v300_v45 = vld [vmem:[#allocation5 + $0x198] sm:$0xff]  ;;  %v299_v46 = vld [vmem:[#allocation5 + $0x190] sm:$0xff] }
  0x4d   : > { %340 = vmatpush1.msra.mxu0 %v265_v15  ;;  %v298_v47 = vld [vmem:[#allocation5 + $0x188] sm:$0xff]  ;;  %v297_v48 = vld [vmem:[#allocation5 + $0x180] sm:$0xff]  ;;  %v296_v49 = vld [vmem:[#allocation5 + $0x178] sm:$0xff] }
  0x4e   : > { %341 = vmatprep.subr.mxu0 %v264_v16  ;;  %v295_v50 = vld [vmem:[#allocation5 + $0x170] sm:$0xff]  ;;  %v294_v51 = vld [vmem:[#allocation5 + $0x168] sm:$0xff]  ;;  %v293_v52 = vld [vmem:[#allocation5 + $0x160] sm:$0xff] }
  0x4f   : > { %342 = vmatpush1.msra.mxu0 %v263_v17  ;;  %v292_v53 = vld [vmem:[#allocation5 + $0x158] sm:$0xff]  ;;  %v291_v54 = vld [vmem:[#allocation5 + $0x150] sm:$0xff]  ;;  %v290_v55 = vld [vmem:[#allocation5 + $0x148] sm:$0xff] }
  0x50   : > { %343 = vmatprep.subr.mxu0 %v262_v18  ;;  %v289_v56 = vld [vmem:[#allocation5 + $0x140] sm:$0xff]  ;;  %v288_v57 = vld [vmem:[#allocation5 + $0x138] sm:$0xff]  ;;  %v287_v58 = vld [vmem:[#allocation5 + $0x130] sm:$0xff] }
  0x51   : > { %344 = vmatpush1.msra.mxu0 %v261_v19  ;;  %v286_v59 = vld [vmem:[#allocation5 + $0x128] sm:$0xff]  ;;  %v285_v60 = vld [vmem:[#allocation5 + $0x120] sm:$0xff]  ;;  %v284_v61 = vld [vmem:[#allocation5 + $0x118] sm:$0xff] }
  0x52   : > { %345 = vmatprep.subr.mxu0 %v260_v20  ;;  %v283_v62 = vld [vmem:[#allocation5 + $0x110] sm:$0xff]  ;;  %v282_v63 = vld [vmem:[#allocation5 + $0x108] sm:$0xff]  ;;  %v281_v0 = vld [vmem:[#allocation5 + $0x100] sm:$0xff] }
  0x53   : > { %346 = vmatpush1.msra.mxu0 %v259_v21  ;;  %v247_v1 = vld [vmem:[%s907_s26] sm:$0xff] }
  0x54   : > { %347 = vmatprep.subr.mxu0 %v258_v22  ;;  %v313_v5 = vld [vmem:[%s966_s2] sm:$0x3] }
  0x55   : > { %348 = vmatpush1.msra.mxu0 %v257_v23  ;;  %v318_v7 = vrot.slane %v313_v5, %v317_v4  ;;  %v322_v8 = vrot.slane %v313_v5, %v321_v6 }
  0x56   : > { %349 = vmatprep.subr.mxu0 %v256_v25 }
  0x57   : > { %350 = vmatpush1.msra.mxu0 %v255_v26 }
  0x58   : > { %351 = vmatprep.subr.mxu0 %v254_v27 }
  0x59   : > { %352 = vmatpush1.msra.mxu0 %v253_v28 }
  0x5a   : > { %353 = vmatprep.subr.mxu0 %v252_v29 }
  0x5b   : > { %354 = vmatpush1.msra.mxu0 %v251_v30 }
  0x5c   : > { %355 = vmatprep.subr.mxu0 %v250_v31 }
  0x5d   : > { %356 = vmatpush1.msra.mxu0 %v249_v32 }
  0x5e   : > { %357 = vmatprep.subr.mxu0 %v312_v33 }
  0x5f   : > { %358 = vmatpush2.msra.mxu0 %v311_v34 }
  0x60   : > { %359 = vmatprep.subr.mxu0 %v310_v35 }
  0x61   : > { %360 = vmatpush2.msra.mxu0 %v309_v36 }
  0x62   : > { %361 = vmatprep.subr.mxu0 %v308_v37 }
  0x63   : > { %362 = vmatpush2.msra.mxu0 %v307_v38 }
  0x64   : > { %363 = vmatprep.subr.mxu0 %v306_v39 }
  0x65   : > { %364 = vmatpush2.msra.mxu0 %v305_v40 }
  0x66   : > { %365 = vmatprep.subr.mxu0 %v304_v41 }
  0x67   : > { %366 = vmatpush2.msra.mxu0 %v303_v42 }
  0x68   : > { %367 = vmatprep.subr.mxu0 %v302_v43 }
  0x69   : > { %368 = vmatpush2.msra.mxu0 %v301_v44 }
  0x6a   : > { %369 = vmatprep.subr.mxu0 %v300_v45 }
  0x6b   : > { %370 = vmatpush2.msra.mxu0 %v299_v46 }
  0x6c   : > { %371 = vmatprep.subr.mxu0 %v298_v47 }
  0x6d   : > { %372 = vmatpush2.msra.mxu0 %v297_v48 }
  0x6e   : > { %373 = vmatprep.subr.mxu0 %v296_v49 }
  0x6f   : > { %374 = vmatpush2.msra.mxu0 %v295_v50 }
  0x70   : > { %375 = vmatprep.subr.mxu0 %v294_v51 }
  0x71   : > { %376 = vmatpush2.msra.mxu0 %v293_v52 }
  0x72   : > { %377 = vmatprep.subr.mxu0 %v292_v53 }
  0x73   : > { %378 = vmatpush2.msra.mxu0 %v291_v54 }
  0x74   : > { %379 = vmatprep.subr.mxu0 %v290_v55 }
  0x75   : > { %380 = vmatpush2.msra.mxu0 %v289_v56 }
  0x76   : > { %381 = vmatprep.subr.mxu0 %v288_v57 }
  0x77   : > { %382 = vmatpush2.msra.mxu0 %v287_v58 }
  0x78   : > { %383 = vmatprep.subr.mxu0 %v286_v59 }
  0x79   : > { %384 = vmatpush2.msra.mxu0 %v285_v60 }
  0x7a   : > { %385 = vmatprep.subr.mxu0 %v284_v61 }
  0x7b   : > { %386 = vmatpush2.msra.mxu0 %v283_v62 }
  0x7c   : > { %387 = vmatprep.subr.mxu0 %v282_v63 }
  0x7d   : > { %388 = vmatpush2.msra.mxu0 %v281_v0 }
  0x7e   : > { %390 = vmatmul.mubr.f32.vlgmr.msra.gmra.mxu0 %v247_v1 }
 0x13e   : > { %v391_v9 = vpop.f32.mrf.mxu0 }
 0x13f   : > { %v392_v10 = vadd.f32 %v391_v9, %v318_v7 }
 0x140   : > { %v393_v11 = vpop.f32.mrf.mxu0 }
 0x141   : > { %396 = vst [vmem:[%s240_s27] sm:$0xff] %v392_v10  ;;  %v394_v12 = vadd.f32 %v393_v11, %v322_v8 }
 0x143   : > { %397 = vst [vmem:[%s240_s27 + $0x8] sm:$0xff] %v394_v12 }
 0x144   : > { %688 = shalt.err (!%p685_p5)
}
 0x145   : > { %s689_s25 = scalar_lea.hbm %s413_s21, 256  ;;  %s693_s18 = scalar_lea.hbm %s967_s3, 512 }
 0x146   : > { %p690_p7 = scmp.ne.s32.totalorder %s413_s21, %s689_s25  ;;  %p694_p9 = scmp.lt.s32.totalorder %s413_s21, %s967_s3 }
 0x147   : > { %p695_p11 = scmp.lt.s32.totalorder %s693_s18, %s689_s25 }
 0x148   : > { %p691_p6 = pnand %p690_p7, %p873_p13 }
 0x149   : > { %p696_p12 = por %p695_p11, %p694_p9 }
 0x14a   : > { %p692_p4 = pneg %p691_p6 }
 0x14c   : > { %p697_p1 = pnand %p696_p12, %p692_p4 }
 0x14e   : > { %700 = shalt.err (!%p697_p1)
}
 0x14f   : > { %552 = dma.vmem_to_hbm [thread:$0]  (%p873_p13), %s416_s29, 256, %s413_s21, %s399_s5  }
 0x150 PF: > { %s427_s22 = sand.u32 1, %s739_s12   ;;  %p979_p8 = scmp.ne.s32.totalorder %s972_s23, 0 }
 0x151   : > { %p980_p10 = scmp.ge.s32.totalorder %s759_s17, 2  ;;  %s428_s24 = scalar_lea.sflag [#allocation4], %s427_s22 }
 0x153   : > { %p563_p0 = pnand %p980_p10, %p979_p8 }
 0x155   : > { %p564_p2 = pneg %p563_p0 }
 0x157   : > { %734 = dma.done.wait (%p564_p2), %s428_s24, 256  }
 0x158   : > { %736 = vsyncadd (%p564_p2), %s428_s24, 4294967040  ;;  %s20_s17 = sadd.s32 1, %s759_s17   ;;  %s981_s12 = smov %s743_s13 }
 0x159   : > { %p17_p3 = scmp.ge.s32.totalorder %s20_s17, 4   ;;  %s982_s13 = smov %s747_s14 }
 0x15a   : > { %s983_s14 = smov %s882_s19  ;;  %s984_s15 = smov %s755_s16 }
 0x15b   : > { %s985_s16 = smov %s987_s28  ;;  %19 = sbr.rel (!%p17_p3) target bundleno = 7 (0x7), region = 85 }
 0x160   :  { %433 = vsyncpa [#allocation3], 1 }
 0x161   :  { %435 = vsyncpa [#allocation3 + $0x1], 1 }
 0x162   :  { %436 = vsyncpa [#allocation6], 1 }
 0x163   :  { %437 = vsyncpa [#allocation4], 1 }
 0x164   :  { %439 = vsyncpa [#allocation4 + $0x1], 1 }

</bundles_post_ra>
